<compile_context>
chip_gen: v6e
topology: v6e:2x2x1
jax: 0.10.0
libtpu: 0.0.40
codegen_flags: <defaults>
</compile_context>

<pallas_src>
import jax
import jax.numpy as jnp
from jax.experimental import pallas as pl
from jax.experimental.pallas import tpu as pltpu


def _round_up(x: int, m: int) -> int:
    return ((x + m - 1) // m) * m


def _pick_tile(n_padded: int, target: int) -> int:
    """Largest multiple of 128 that is <= target and divides n_padded."""
    t = max(128, (min(target, n_padded) // 128) * 128)
    while n_padded % t:
        t -= 128
    return t


def gcn_kernel(text_ref, adj_ref, w_ref, bias_ref, out_ref, acc_ref, denom_ref):
    # Grid: (batch, row-tile i, contraction-tile k). Accumulate over k.
    k = pl.program_id(2)

    @pl.when(k == 0)
    def _():
        acc_ref[...] = jnp.zeros_like(acc_ref)
        # Fold the "+1" of the denominator into the accumulator init.
        denom_ref[...] = jnp.ones_like(denom_ref)

    adj = adj_ref[0]      # (TM, TK)    bf16
    text = text_ref[0]    # (TK, Fin_p) bf16

    # agg += adj @ text  (f32 accumulation on the MXU).
    acc_ref[...] += jnp.dot(adj, text, preferred_element_type=jnp.float32)
    # Row sums of adj (padded columns are zero -> no effect); XLU slot, ~free.
    denom_ref[...] += jnp.sum(adj.astype(jnp.float32), axis=1, keepdims=True)

    @pl.when(k == pl.num_programs(2) - 1)
    def _():
        # (D^-1 (A T)) W == D^-1 (A (T W))  -> matches the PyTorch ordering.
        inv = pl.reciprocal(denom_ref[...], approx=True)             # (TM, 1)
        agg = acc_ref[...] * inv                                     # (TM, Fin_p)
        out = jnp.dot(agg, w_ref[...], preferred_element_type=jnp.float32)
        out_ref[0] = (out + bias_ref[...]).astype(out_ref.dtype)


def graph_convolution(text, adj, w, bias=None):
    """text: (B, N, Fin), adj: (B, N, N), w: (Fin, Fout), bias: (1, Fout) or None."""
    B, N, Fin = text.shape
    Fout = w.shape[1]

    # Pad to lane/sublane friendly sizes (multiples of 128).
    N_p = _round_up(N, 128)
    Fin_p = _round_up(Fin, 128)
    Fout_p = _round_up(Fout, 128)

    # Node-dimension tiles: 256-row output tiles, 512-wide contraction tiles —
    # comfortably inside v7x's 64 MiB VMEM with double buffering.
    TM = _pick_tile(N_p, 256)
    TK = _pick_tile(N_p, 512)

    # bf16 streams for the MXU; params stay f32 (tiny, resident in VMEM).
    text_p = jnp.pad(text.astype(jnp.bfloat16),
                     ((0, 0), (0, N_p - N), (0, Fin_p - Fin)))
    adj_p = jnp.pad(adj.astype(jnp.bfloat16),
                    ((0, 0), (0, N_p - N), (0, N_p - N)))
    w_p = jnp.pad(w.astype(jnp.float32), ((0, Fin_p - Fin), (0, Fout_p - Fout)))
    if bias is None:
        bias_p = jnp.zeros((1, Fout_p), jnp.float32)
    else:
        bias_p = jnp.pad(bias.astype(jnp.float32).reshape(1, Fout),
                         ((0, 0), (0, Fout_p - Fout)))

    grid = (B, N_p // TM, N_p // TK)

    out_p = pl.pallas_call(
        gcn_kernel,
        out_shape=jax.ShapeDtypeStruct((B, N_p, Fout_p), jnp.float32),
        grid_spec=pltpu.PrefetchScalarGridSpec(
            num_scalar_prefetch=0,
            grid=grid,
            in_specs=[
                pl.BlockSpec((1, TK, Fin_p), lambda b, i, k: (b, k, 0)),   # text
                pl.BlockSpec((1, TM, TK), lambda b, i, k: (b, i, k)),      # adj
                pl.BlockSpec((Fin_p, Fout_p), lambda b, i, k: (0, 0)),     # w (resident)
                pl.BlockSpec((1, Fout_p), lambda b, i, k: (0, 0)),         # bias (resident)
            ],
            out_specs=pl.BlockSpec((1, TM, Fout_p), lambda b, i, k: (b, i, 0)),
            scratch_shapes=[
                pltpu.VMEM((TM, Fin_p), jnp.float32),   # agg accumulator
                pltpu.VMEM((TM, 1), jnp.float32),       # denom accumulator
            ],
        ),
        compiler_params=pltpu.CompilerParams(
            # batch and row-tile axes are independent (megacore-parallel);
            # contraction axis carries the accumulators -> arbitrary.
            dimension_semantics=("parallel", "parallel", "arbitrary"),
            vmem_limit_bytes=48 * 1024 * 1024,
        ),
    )(text_p, adj_p, w_p, bias_p)

    return out_p[:, :N, :Fout]


if __name__ == "__main__":
    # Small, module-consistent shapes.
    B, N = 2, 8
    IN_FEATURES = 16
    OUT_FEATURES = 32

    key = jax.random.PRNGKey(0)
    k_text, k_adj, k_w, k_b = jax.random.split(key, 4)

    text = jax.random.normal(k_text, (B, N, IN_FEATURES), dtype=jnp.float32)
    adj = jax.random.uniform(k_adj, (B, N, N), dtype=jnp.float32)
    w = jax.random.normal(k_w, (IN_FEATURES, OUT_FEATURES), dtype=jnp.float32) * 0.1
    bias = jax.random.normal(k_b, (1, OUT_FEATURES), dtype=jnp.float32) * 0.1

    gcn = jax.jit(graph_convolution)
    out = jax.block_until_ready(gcn(text, adj, w, bias))

    # Pure-JAX f32 reference (kernel uses bf16 inputs + approx reciprocal,
    # so tolerance is widened accordingly).
    hidden_ref = jnp.matmul(text, w)
    denom_ref = jnp.sum(adj, axis=2, keepdims=True) + 1.0
    out_ref = jnp.matmul(adj, hidden_ref) / denom_ref + bias
    assert out.shape == out_ref.shape, "shape mismatch vs reference"
    assert jnp.allclose(out, out_ref, atol=5e-2, rtol=5e-2), "mismatch vs reference"

    print("KERNEL_OK")
</pallas_src>

<mosaic_0001>
module attributes {stable_mosaic.version = 11 : i64} {
  func.func @gcn_kernel(%arg0: i32, %arg1: i32, %arg2: i32, %arg3: memref<1x128x128xbf16, #tpu.memory_space<vmem>>, %arg4: memref<1x128x128xbf16, #tpu.memory_space<vmem>>, %arg5: memref<128x128xf32, #tpu.memory_space<vmem>>, %arg6: memref<1x128xf32, #tpu.memory_space<vmem>>, %arg7: memref<1x128x128xf32, #tpu.memory_space<vmem>>, %arg8: memref<128x128xf32, #tpu.memory_space<vmem>>, %arg9: memref<128x1xf32, #tpu.memory_space<vmem>>) attributes {dimension_semantics = [#tpu.dimension_semantics<parallel>, #tpu.dimension_semantics<parallel>, #tpu.dimension_semantics<arbitrary>], iteration_bounds = array<i64: 2, 1, 1>, scalar_prefetch = 0 : i64, scratch_operands = 2 : i64, tpu.core_type = #tpu.core_type<tc>, window_params = [{transform_indices = @transform_0, window_bounds = array<i64: 1, 128, 128>}, {transform_indices = @transform_1, window_bounds = array<i64: 1, 128, 128>}, {pipeline_mode = #tpu.pipeline_mode<synchronous>, transform_indices = @transform_2, window_bounds = array<i64: 128, 128>}, {pipeline_mode = #tpu.pipeline_mode<synchronous>, transform_indices = @transform_3, window_bounds = array<i64: 1, 128>}, {transform_indices = @transform_4, window_bounds = array<i64: 1, 128, 128>}]} {
    %c0_i32 = arith.constant 0 : i32
    %0 = arith.cmpi eq, %arg2, %c0_i32 : i32
    %1 = arith.extui %0 : i1 to i32
    %c0_i32_0 = arith.constant 0 : i32
    %2 = arith.cmpi ne, %1, %c0_i32_0 : i32
    scf.if %2 {
      %cst_17 = arith.constant 0.000000e+00 : f32
      %20 = vector.broadcast %cst_17 : f32 to vector<128x128xf32>
      %c0_18 = arith.constant 0 : index
      %c0_19 = arith.constant 0 : index
      %21 = vector.load %arg8[%c0_18, %c0_19] : memref<128x128xf32, #tpu.memory_space<vmem>>, vector<128x128xf32>
      tpu.vector_store %arg8[%c0_18, %c0_19], %20 {strides = array<i32>} : memref<128x128xf32, #tpu.memory_space<vmem>>, vector<128x128xf32>,
      %cst_20 = arith.constant 1.000000e+00 : f32
      %22 = vector.broadcast %cst_20 : f32 to vector<128x1xf32>
      %c0_21 = arith.constant 0 : index
      %c0_22 = arith.constant 0 : index
      %23 = vector.load %arg9[%c0_21, %c0_22] : memref<128x1xf32, #tpu.memory_space<vmem>>, vector<128x1xf32>
      tpu.vector_store %arg9[%c0_21, %c0_22], %22 {strides = array<i32>} : memref<128x1xf32, #tpu.memory_space<vmem>>, vector<128x1xf32>,
    } else {
    }
    %c0 = arith.constant 0 : index
    %c0_1 = arith.constant 0 : index
    %c0_2 = arith.constant 0 : index
    %3 = vector.load %arg4[%c0, %c0_1, %c0_2] : memref<1x128x128xbf16, #tpu.memory_space<vmem>>, vector<1x128x128xbf16>
    %4 = vector.shape_cast %3 : vector<1x128x128xbf16> to vector<128x128xbf16>
    %c0_3 = arith.constant 0 : index
    %c0_4 = arith.constant 0 : index
    %c0_5 = arith.constant 0 : index
    %5 = vector.load %arg3[%c0_3, %c0_4, %c0_5] : memref<1x128x128xbf16, #tpu.memory_space<vmem>>, vector<1x128x128xbf16>
    %6 = vector.shape_cast %5 : vector<1x128x128xbf16> to vector<128x128xbf16>
    %c0_6 = arith.constant 0 : index
    %c0_7 = arith.constant 0 : index
    %7 = vector.load %arg8[%c0_6, %c0_7] : memref<128x128xf32, #tpu.memory_space<vmem>>, vector<128x128xf32>
    %cst = arith.constant dense<0.000000e+00> : vector<128x128xf32>
    %8 = tpu.matmul %4, %6, %cst {dimension_numbers = #tpu.dot_dimension_numbers<[1], [0], [0], [1], [0, 0, 1, 1], [], []>} : vector<128x128xbf16>, vector<128x128xbf16>, vector<128x128xf32> -> vector<128x128xf32>
    %9 = arith.addf %7, %8 : vector<128x128xf32>
    %c0_8 = arith.constant 0 : index
    %c0_9 = arith.constant 0 : index
    %10 = vector.load %arg8[%c0_8, %c0_9] : memref<128x128xf32, #tpu.memory_space<vmem>>, vector<128x128xf32>
    tpu.vector_store %arg8[%c0_8, %c0_9], %9 {strides = array<i32>} : memref<128x128xf32, #tpu.memory_space<vmem>>, vector<128x128xf32>,
    %c0_10 = arith.constant 0 : index
    %c0_11 = arith.constant 0 : index
    %11 = vector.load %arg9[%c0_10, %c0_11] : memref<128x1xf32, #tpu.memory_space<vmem>>, vector<128x1xf32>
    %12 = arith.extf %4 : vector<128x128xbf16> to vector<128x128xf32>
    %cst_12 = arith.constant dense<0.000000e+00> : vector<128xf32>
    %13 = vector.multi_reduction <add>, %12, %cst_12 [1] : vector<128x128xf32> to vector<128xf32>
    %14 = vector.shape_cast %13 : vector<128xf32> to vector<128x1xf32>
    %15 = arith.addf %11, %14 : vector<128x1xf32>
    %c0_13 = arith.constant 0 : index
    %c0_14 = arith.constant 0 : index
    %16 = vector.load %arg9[%c0_13, %c0_14] : memref<128x1xf32, #tpu.memory_space<vmem>>, vector<128x1xf32>
    tpu.vector_store %arg9[%c0_13, %c0_14], %15 {strides = array<i32>} : memref<128x1xf32, #tpu.memory_space<vmem>>, vector<128x1xf32>,
    %c0_i32_15 = arith.constant 0 : i32
    %17 = arith.cmpi eq, %arg2, %c0_i32_15 : i32
    %18 = arith.extui %17 : i1 to i32
    %c0_i32_16 = arith.constant 0 : i32
    %19 = arith.cmpi ne, %18, %c0_i32_16 : i32
    scf.if %19 {
      %c0_17 = arith.constant 0 : index
      %c0_18 = arith.constant 0 : index
      %20 = vector.load %arg9[%c0_17, %c0_18] : memref<128x1xf32, #tpu.memory_space<vmem>>, vector<128x1xf32>
      %21 = tpu.reciprocal %20 {approx = true} : vector<128x1xf32> -> vector<128x1xf32>
      %c0_19 = arith.constant 0 : index
      %c0_20 = arith.constant 0 : index
      %22 = vector.load %arg8[%c0_19, %c0_20] : memref<128x128xf32, #tpu.memory_space<vmem>>, vector<128x128xf32>
      %23 = vector.broadcast %21 : vector<128x1xf32> to vector<128x128xf32>
      %24 = arith.mulf %22, %23 : vector<128x128xf32>
      %c0_21 = arith.constant 0 : index
      %c0_22 = arith.constant 0 : index
      %25 = vector.load %arg5[%c0_21, %c0_22] : memref<128x128xf32, #tpu.memory_space<vmem>>, vector<128x128xf32>
      %cst_23 = arith.constant dense<0.000000e+00> : vector<128x128xf32>
      %26 = tpu.matmul %24, %25, %cst_23 {dimension_numbers = #tpu.dot_dimension_numbers<[1], [0], [0], [1], [0, 0, 1, 1], [], []>} : vector<128x128xf32>, vector<128x128xf32>, vector<128x128xf32> -> vector<128x128xf32>
      %c0_24 = arith.constant 0 : index
      %c0_25 = arith.constant 0 : index
      %27 = vector.load %arg6[%c0_24, %c0_25] : memref<1x128xf32, #tpu.memory_space<vmem>>, vector<1x128xf32>
      %28 = vector.broadcast %27 : vector<1x128xf32> to vector<128x128xf32>
      %29 = arith.addf %26, %28 : vector<128x128xf32>
      %c0_26 = arith.constant 0 : index
      %c0_27 = arith.constant 0 : index
      %c0_28 = arith.constant 0 : index
      %30 = vector.load %arg7[%c0_26, %c0_27, %c0_28] : memref<1x128x128xf32, #tpu.memory_space<vmem>>, vector<1x128x128xf32>
      %31 = vector.shape_cast %30 : vector<1x128x128xf32> to vector<128x128xf32>
      %32 = vector.shape_cast %29 : vector<128x128xf32> to vector<1x128x128xf32>
      tpu.vector_store %arg7[%c0_26, %c0_27, %c0_28], %32 {strides = array<i32>} : memref<1x128x128xf32, #tpu.memory_space<vmem>>, vector<1x128x128xf32>,
    } else {
    }
    return
  }
  func.func @transform_0(%arg0: i32, %arg1: i32, %arg2: i32) -> (i32, i32, i32) {
    %c0_i32 = arith.constant 0 : i32
    %c0_i32_0 = arith.constant 0 : i32
    return %arg0, %arg2, %c0_i32 : i32, i32, i32
  }
  func.func @transform_1(%arg0: i32, %arg1: i32, %arg2: i32) -> (i32, i32, i32) {
    %c0_i32 = arith.constant 0 : i32
    return %arg0, %arg1, %arg2 : i32, i32, i32
  }
  func.func @transform_2(%arg0: i32, %arg1: i32, %arg2: i32) -> (i32, i32) {
    %c0_i32 = arith.constant 0 : i32
    %c0_i32_0 = arith.constant 0 : i32
    %c0_i32_1 = arith.constant 0 : i32
    return %c0_i32, %c0_i32_0 : i32, i32
  }
  func.func @transform_3(%arg0: i32, %arg1: i32, %arg2: i32) -> (i32, i32) {
    %c0_i32 = arith.constant 0 : i32
    %c0_i32_0 = arith.constant 0 : i32
    %c0_i32_1 = arith.constant 0 : i32
    return %c0_i32, %c0_i32_0 : i32, i32
  }
  func.func @transform_4(%arg0: i32, %arg1: i32, %arg2: i32) -> (i32, i32, i32) {
    %c0_i32 = arith.constant 0 : i32
    %c0_i32_0 = arith.constant 0 : i32
    return %arg0, %arg1, %c0_i32 : i32, i32, i32
  }
}

</mosaic_0001>

<bundles_post_ra>
// kernel: graph_convolution.1
= control target key start
LH: loop header
LB: loop body
LE: loop exit
PB: predicated region body
PF: predicated region fallthrough
CT: control target
= control target key end

     0   :  { %s1445_s15 = smov 0   ;;  %s1447_s16 = smov 0   ;;  %s1617_s0 = inlined_call_operand.vmem [shape: bf16[2,128,128], index: 0, kind: input, shape index: {}]   ;;  %s1618_s1 = inlined_call_operand.vmem [shape: bf16[2,128,128], index: 1, kind: input, shape index: {}]   ;;  %s1619_s2 = inlined_call_operand.vmem [shape: f32[128,128], index: 2, kind: input, shape index: {}]   ;;  %s1620_s3 = inlined_call_operand.vmem [shape: f32[1,128], index: 3, kind: input, shape index: {}]   ;;  %s1621_s4 = inlined_call_operand.vmem [shape: f32[2,128,128], index: 4, kind: output, shape index: {}]  }
   0x1   :  { %s1449_s17 = smov 0  }
   0x2 LB: > { %s33_s18 = sadd.s32 1, %s1412_s16  ;;  %p1145_p0 = scmp.ge.s32.totalorder %s1416_s17, 1  ;;  %s1416_s17 = sphi %s1449_s17, %s14_s17   ;;  %s1412_s16 = sphi %s1447_s16, %s1623_s16   ;;  %s1408_s15 = sphi %s1445_s15, %s1622_s15  }
   0x3   : > { %p35_p1 = scmp.ge.s32.totalorder %s33_s18, 2  ;;  %p212_p2 = scmp.lt.s32.totalorder %s1416_s17, 3 }
   0x5   : > { %s1625_s18 = smov (%p35_p1, %s33_s18), 0  ;;  %p213_p3 = pnand %p1145_p0, %p212_p2 }
   0x6   : > { %p259_p4 = scmp.lt.s32.totalorder (!%p213_p3), %s1408_s15, 1 }
   0x7   : > { %216 = sbr.rel (%p213_p3) target bundleno = 549 (0x225), region = 36 }
   0xc   : > { %vm312_vm0 = vcmask 7168   ;;  %v1418_v0 = vmov 1.0   ;;  %s1627_s15 = smov (!%p259_p4, %s1408_s15), 1  ;;  %v1419_v33 = vmov 0   ;;  %v861_v34 = vld [vmem:[%s1619_s2 + $0x78] sm:$0xff]  ;;  %v860_v35 = vld [vmem:[%s1619_s2 + $0x70] sm:$0xff] }
   0xd   : > { %315 = vst.msk [vmem:[#allocation3 + $0x10] sm:$0xff] %vm312_vm0, %v1418_v0  ;;  %313 = vst.msk [vmem:[#allocation3] sm:$0xff] %vm312_vm0, %v1418_v0  ;;  %s1171_s19 = sshll.u32 %s1627_s15, 6  ;;  %1336 = vset.pattern.permute.xlu0 %v1419_v33  ;;  %1337 = vset.pattern.permute.xlu1 %v1419_v33  ;;  %v859_v36 = vld [vmem:[%s1619_s2 + $0x68] sm:$0xff]  ;;  %v858_v37 = vld [vmem:[%s1619_s2 + $0x60] sm:$0xff]  ;;  %s1173_s10 = sshll.u32 %s1627_s15, 7 }
   0xe   : > { %314 = vst.msk [vmem:[#allocation3 + $0x8] sm:$0xff] %vm312_vm0, %v1418_v0  ;;  %316 = vst.msk [vmem:[#allocation3 + $0x18] sm:$0xff] %vm312_vm0, %v1418_v0  ;;  %s1486_s22 = scalar_lea.vmem %s1618_s1, %s1171_s19  ;;  %s1495_s25 = scalar_lea.vmem %s1617_s0, %s1171_s19  ;;  %1254 = vmatprep.subr.mxu1 %v861_v34  ;;  %v857_v38 = vld [vmem:[%s1619_s2 + $0x58] sm:$0xff]  ;;  %v856_v39 = vld [vmem:[%s1619_s2 + $0x50] sm:$0xff] }
   0xf   : > { %317 = vst.msk [vmem:[#allocation3 + $0x20] sm:$0xff] %vm312_vm0, %v1418_v0  ;;  %318 = vst.msk [vmem:[#allocation3 + $0x28] sm:$0xff] %vm312_vm0, %v1418_v0  ;;  %v1489_v1 = vld [vmem:[%s1486_s22 + $0x8] sm:$0xff]   ;;  %v329_v2 = vld [vmem:[%s1486_s22] sm:$0xff]   ;;  %1255 = vmatpush3.msra.mxu1 %v861_v34  ;;  %s1590_s19 = scalar_lea.vmem %s1621_s4, %s1173_s10 }
  0x10   : > { %319 = vst.msk [vmem:[#allocation3 + $0x30] sm:$0xff] %vm312_vm0, %v1418_v0  ;;  %320 = vst.msk [vmem:[#allocation3 + $0x38] sm:$0xff] %vm312_vm0, %v1418_v0  ;;  %v620_v3 = vunpack.c.l.bf16 %v1489_v1  ;;  %v618_v4 = vunpack.c.l.bf16 %v329_v2  ;;  %v1499_v5 = vld [vmem:[%s1486_s22 + $0x10] sm:$0xff]   ;;  %v621_v6 = vunpack.c.h.bf16 %v1489_v1  ;;  %v619_v7 = vunpack.c.h.bf16 %v329_v2  ;;  %v1345_v8 = vld [vmem:[%s1495_s25 + $0x38] sm:$0xff]   ;;  %1238 = vmatprep.mubr.bf16.mxu0 %v329_v2  ;;  %1256 = vmatprep.subr.mxu1 %v860_v35 }
  0x11   : > { %321 = vst.msk [vmem:[#allocation3 + $0x40] sm:$0xff] %vm312_vm0, %v1418_v0  ;;  %322 = vst.msk [vmem:[#allocation3 + $0x48] sm:$0xff] %vm312_vm0, %v1418_v0  ;;  %v1346_v9 = vld [vmem:[%s1495_s25 + $0x30] sm:$0xff]   ;;  %1222 = vmatprep.subr.bf16.mxu0 %v1345_v8  ;;  %v623_v10 = vunpack.c.h.bf16 %v1499_v5  ;;  %v336_v11 = vld [vmem:[%s1486_s22 + $0x18] sm:$0xff]   ;;  %v622_v12 = vunpack.c.l.bf16 %v1499_v5  ;;  %1257 = vmatpush3.msra.mxu1 %v860_v35 }
  0x12   : > { %323 = vst.msk [vmem:[#allocation3 + $0x50] sm:$0xff] %vm312_vm0, %v1418_v0  ;;  %324 = vst.msk [vmem:[#allocation3 + $0x58] sm:$0xff] %vm312_vm0, %v1418_v0  ;;  %638 = vadd.xlane.f32.xlu1 %v620_v3  ;;  %634 = vadd.xlane.f32.xlu0 %v618_v4  ;;  %v1347_v13 = vld [vmem:[%s1495_s25 + $0x28] sm:$0xff]   ;;  %v625_v14 = vunpack.c.h.bf16 %v336_v11  ;;  %v624_v15 = vunpack.c.l.bf16 %v336_v11  ;;  %v338_v16 = vld [vmem:[%s1486_s22 + $0x20] sm:$0xff]  }
  0x13   : > { %325 = vst.msk [vmem:[#allocation3 + $0x60] sm:$0xff] %vm312_vm0, %v1418_v0  ;;  %326 = vst.msk [vmem:[#allocation3 + $0x68] sm:$0xff] %vm312_vm0, %v1418_v0  ;;  %1223 = vmatpush3.bf16.msra.mxu0 %v1345_v8  ;;  %v1348_v17 = vld [vmem:[%s1495_s25 + $0x20] sm:$0xff]   ;;  %v627_v18 = vunpack.c.h.bf16 %v338_v16  ;;  %v626_v19 = vunpack.c.l.bf16 %v338_v16  ;;  %v340_v20 = vld [vmem:[%s1486_s22 + $0x28] sm:$0xff]   ;;  %1258 = vmatprep.subr.mxu1 %v859_v36 }
  0x14   : > { %327 = vst.msk [vmem:[#allocation3 + $0x70] sm:$0xff] %vm312_vm0, %v1418_v0  ;;  %328 = vst.msk [vmem:[#allocation3 + $0x78] sm:$0xff] %vm312_vm0, %v1418_v0  ;;  %1224 = vmatprep.subr.bf16.mxu0 %v1346_v9  ;;  %v1349_v21 = vld [vmem:[%s1495_s25 + $0x18] sm:$0xff]   ;;  %v629_v22 = vunpack.c.h.bf16 %v340_v20  ;;  %v628_v23 = vunpack.c.l.bf16 %v340_v20  ;;  %v342_v24 = vld [vmem:[%s1486_s22 + $0x30] sm:$0xff]   ;;  %1259 = vmatpush3.msra.mxu1 %v859_v36 }
  0x15   : > { %v1350_v25 = vld [vmem:[%s1495_s25 + $0x10] sm:$0xff]   ;;  %v631_v26 = vunpack.c.h.bf16 %v342_v24  ;;  %v630_v27 = vunpack.c.l.bf16 %v342_v24  ;;  %v344_v28 = vld [vmem:[%s1486_s22 + $0x38] sm:$0xff]   ;;  %v1351_v29 = vld [vmem:[%s1495_s25 + $0x8] sm:$0xff]   ;;  %1260 = vmatprep.subr.mxu1 %v858_v37 }
  0x16   : > { %640 = vadd.xlane.f32.xlu1 %v621_v6  ;;  %636 = vadd.xlane.f32.xlu0 %v619_v7  ;;  %v633_v30 = vunpack.c.h.bf16 %v344_v28  ;;  %v632_v31 = vunpack.c.l.bf16 %v344_v28  ;;  %v1352_v32 = vld [vmem:[%s1495_s25] sm:$0xff]   ;;  %v855_v40 = vld [vmem:[%s1619_s2 + $0x48] sm:$0xff]  ;;  %v853_v42 = vld [vmem:[%s1619_s2 + $0x38] sm:$0xff] }
  0x17   : > { %1225 = vmatpush3.bf16.msra.mxu0 %v1346_v9  ;;  %1261 = vmatpush3.msra.mxu1 %v858_v37  ;;  %v854_v41 = vld [vmem:[%s1619_s2 + $0x40] sm:$0xff]  ;;  %v852_v43 = vld [vmem:[%s1619_s2 + $0x30] sm:$0xff]  ;;  %v851_v44 = vld [vmem:[%s1619_s2 + $0x28] sm:$0xff] }
  0x18   : > { %1226 = vmatprep.subr.bf16.mxu0 %v1347_v13  ;;  %1262 = vmatprep.subr.mxu1 %v857_v38  ;;  %v850_v45 = vld [vmem:[%s1619_s2 + $0x20] sm:$0xff]  ;;  %v849_v46 = vld [vmem:[%s1619_s2 + $0x18] sm:$0xff]  ;;  %v604_v47 = vld [vmem:[#allocation3 + $0x10] sm:$0xff] }
  0x19   : > { %1263 = vmatpush3.msra.mxu1 %v857_v38  ;;  %v602_v48 = vld [vmem:[#allocation3] sm:$0xff]  ;;  %v605_v53 = vld [vmem:[#allocation3 + $0x18] sm:$0xff]  ;;  %v603_v54 = vld [vmem:[#allocation3 + $0x8] sm:$0xff] }
  0x1a   : > { %644 = vadd.xlane.f32.xlu1 %v623_v10  ;;  %642 = vadd.xlane.f32.xlu0 %v622_v12  ;;  %v607_v59 = vld [vmem:[#allocation3 + $0x28] sm:$0xff]  ;;  %v606_v60 = vld [vmem:[#allocation3 + $0x20] sm:$0xff]  ;;  %v608_v2 = vld [vmem:[#allocation3 + $0x30] sm:$0xff] }
  0x1b   : > { %1227 = vmatpush3.bf16.msra.mxu0 %v1347_v13  ;;  %1264 = vmatprep.subr.mxu1 %v856_v39  ;;  %v611_v7 = vld [vmem:[#allocation3 + $0x48] sm:$0xff]  ;;  %v610_v10 = vld [vmem:[#allocation3 + $0x40] sm:$0xff]  ;;  %v617_v33 = vld [vmem:[#allocation3 + $0x78] sm:$0xff] }
  0x1c   : > { %1228 = vmatprep.subr.bf16.mxu0 %v1348_v17  ;;  %1265 = vmatpush3.msra.mxu1 %v856_v39  ;;  %v616_v36 = vld [vmem:[#allocation3 + $0x70] sm:$0xff] }
  0x1d   : > { %1266 = vmatprep.subr.mxu1 %v855_v40 }
  0x1e   : > { %648 = vadd.xlane.f32.xlu1 %v625_v14  ;;  %646 = vadd.xlane.f32.xlu0 %v624_v15 }
  0x1f   : > { %1229 = vmatpush3.bf16.msra.mxu0 %v1348_v17  ;;  %1267 = vmatpush3.msra.mxu1 %v855_v40  ;;  %v612_v17 = vld [vmem:[#allocation3 + $0x50] sm:$0xff] }
  0x20   : > { %1230 = vmatprep.subr.bf16.mxu0 %v1349_v21  ;;  %1268 = vmatprep.subr.mxu1 %v854_v41 }
  0x21   : > { %1269 = vmatpush3.msra.mxu1 %v854_v41 }
  0x22   : > { %652 = vadd.xlane.f32.xlu1 %v627_v18  ;;  %650 = vadd.xlane.f32.xlu0 %v626_v19 }
  0x23   : > { %1231 = vmatpush3.bf16.msra.mxu0 %v1349_v21  ;;  %1270 = vmatprep.subr.mxu1 %v853_v42  ;;  %v848_v21 = vld [vmem:[%s1619_s2 + $0x10] sm:$0xff] }
  0x24   : > { %1232 = vmatprep.subr.bf16.mxu0 %v1350_v25  ;;  %1271 = vmatpush3.msra.mxu1 %v853_v42 }
  0x25   : > { %1272 = vmatprep.subr.mxu1 %v852_v43 }
  0x26   : > { %656 = vadd.xlane.f32.xlu1 %v629_v22  ;;  %654 = vadd.xlane.f32.xlu0 %v628_v23  ;;  %v847_v22 = vld [vmem:[%s1619_s2 + $0x8] sm:$0xff] }
  0x27   : > { %1233 = vmatpush3.bf16.msra.mxu0 %v1350_v25  ;;  %1273 = vmatpush3.msra.mxu1 %v852_v43  ;;  %v615_v25 = vld [vmem:[#allocation3 + $0x68] sm:$0xff] }
  0x28   : > { %1234 = vmatprep.subr.bf16.mxu0 %v1351_v29  ;;  %1274 = vmatprep.subr.mxu1 %v851_v44 }
  0x29   : > { %1275 = vmatpush3.msra.mxu1 %v851_v44 }
  0x2a   : > { %660 = vadd.xlane.f32.xlu1 %v631_v26  ;;  %658 = vadd.xlane.f32.xlu0 %v630_v27  ;;  %v614_v26 = vld [vmem:[#allocation3 + $0x60] sm:$0xff] }
  0x2b   : > { %1235 = vmatpush3.bf16.msra.mxu0 %v1351_v29  ;;  %1276 = vmatprep.subr.mxu1 %v850_v45 }
  0x2c   : > { %1236 = vmatprep.subr.bf16.mxu0 %v1352_v32  ;;  %1277 = vmatpush3.msra.mxu1 %v850_v45 }
  0x2d   : > { %1278 = vmatprep.subr.mxu1 %v849_v46 }
  0x2e   : > { %664 = vadd.xlane.f32.xlu1 %v633_v30  ;;  %662 = vadd.xlane.f32.xlu0 %v632_v31  ;;  %v846_v31 = vld [vmem:[%s1619_s2] sm:$0xff] }
  0x2f   : > { %1237 = vmatpush3.bf16.msra.mxu0 %v1352_v32  ;;  %1279 = vmatpush3.msra.mxu1 %v849_v46 }
  0x30   : > { %1280 = vmatprep.subr.mxu1 %v848_v21 }
  0x31   : > { %1281 = vmatpush3.msra.mxu1 %v848_v21 }
  0x32   : > { %1239 = vmatmul.mubr.bf16.vlgmr.msra.gmra.mxu0 %v1489_v1  ;;  %v609_v1 = vld [vmem:[#allocation3 + $0x38] sm:$0xff]  ;;  %1282 = vmatprep.subr.mxu1 %v847_v22 }
  0x33   : > { %1242 = vmatprep.mubr.bf16.mxu0 %v1499_v5  ;;  %1283 = vmatpush3.msra.mxu1 %v847_v22 }
  0x34   : > { %1284 = vmatprep.subr.mxu1 %v846_v31 }
  0x35   : > { %1285 = vmatpush3.msra.mxu1 %v846_v31 }
  0x3a   : > { %1243 = vmatmul.mubr.bf16.gmra.mxu0 %v336_v11 }
  0x3b   : > { %1246 = vmatprep.mubr.bf16.mxu0 %v338_v16  ;;  %v613_v16 = vld [vmem:[#allocation3 + $0x58] sm:$0xff] }
  0x42   : > { %1247 = vmatmul.mubr.bf16.gmra.mxu0 %v340_v20 }
  0x43   : > { %1250 = vmatprep.mubr.bf16.mxu0 %v342_v24 }
  0x4a   : > { %1251 = vmatmul.mubr.bf16.gmra.mxu0 %v344_v28 }
  0x9b   : > { %v639_v49 = vpop.xlane.xlu1 %638  ;;  %v635_v50 = vpop.xlane.xlu0 %634 }
  0x9c   : > { %v668_v51 = vadd.f32 %v639_v49, %v604_v47  ;;  %v666_v52 = vadd.f32 %v635_v50, %v602_v48 }
  0x9e   : > { %685 = vst.msk [vmem:[#allocation3 + $0x10] sm:$0xff] %vm312_vm0, %v668_v51  ;;  %683 = vst.msk [vmem:[#allocation3] sm:$0xff] %vm312_vm0, %v666_v52 }
  0x9f   : > { %v641_v55 = vpop.xlane.xlu1 %640  ;;  %v637_v56 = vpop.xlane.xlu0 %636 }
  0xa0   : > { %v669_v57 = vadd.f32 %v641_v55, %v605_v53  ;;  %v667_v58 = vadd.f32 %v637_v56, %v603_v54 }
  0xa2   : > { %686 = vst.msk [vmem:[#allocation3 + $0x18] sm:$0xff] %vm312_vm0, %v669_v57  ;;  %684 = vst.msk [vmem:[#allocation3 + $0x8] sm:$0xff] %vm312_vm0, %v667_v58 }
  0xa3   : > { %v645_v61 = vpop.xlane.xlu1 %644  ;;  %v643_v62 = vpop.xlane.xlu0 %642 }
  0xa4   : > { %v671_v63 = vadd.f32 %v645_v61, %v607_v59  ;;  %v670_v0 = vadd.f32 %v643_v62, %v606_v60 }
  0xa5   : > { %v702_v3 = vld [vmem:[#allocation3] sm:$0xff]  ;;  %v704_v11 = vld [vmem:[#allocation3 + $0x10] sm:$0xff] }
  0xa6   : > { %688 = vst.msk [vmem:[#allocation3 + $0x28] sm:$0xff] %vm312_vm0, %v671_v63  ;;  %687 = vst.msk [vmem:[#allocation3 + $0x20] sm:$0xff] %vm312_vm0, %v670_v0  ;;  %1362 = vrcp.f32 %v702_v3 }
  0xa7   : > { %v649_v4 = vpop.xlane.xlu1 %648  ;;  %v647_v5 = vpop.xlane.xlu0 %646 }
  0xa8   : > { %v673_v6 = vadd.f32 %v649_v4, %v609_v1  ;;  %v672_v8 = vadd.f32 %v647_v5, %v608_v2 }
  0xa9   : > { %v703_v9 = vld [vmem:[#allocation3 + $0x8] sm:$0xff]  ;;  %v705_v18 = vld [vmem:[#allocation3 + $0x18] sm:$0xff] }
  0xaa   : > { %690 = vst.msk [vmem:[#allocation3 + $0x38] sm:$0xff] %vm312_vm0, %v673_v6  ;;  %689 = vst.msk [vmem:[#allocation3 + $0x30] sm:$0xff] %vm312_vm0, %v672_v8  ;;  %1364 = vrcp.f32 %v703_v9 }
  0xab   : > { %v653_v12 = vpop.xlane.xlu1 %652  ;;  %v651_v13 = vpop.xlane.xlu0 %650  ;;  %1366 = vrcp.f32 %v704_v11 }
  0xac   : > { %v675_v14 = vadd.f32 %v653_v12, %v611_v7  ;;  %v674_v15 = vadd.f32 %v651_v13, %v610_v10  ;;  %1368 = vrcp.f32 %v705_v18 }
  0xad   : > { %v706_v27 = vld [vmem:[#allocation3 + $0x20] sm:$0xff]  ;;  %v707_v37 = vld [vmem:[#allocation3 + $0x28] sm:$0xff] }
  0xae   : > { %692 = vst.msk [vmem:[#allocation3 + $0x48] sm:$0xff] %vm312_vm0, %v675_v14  ;;  %691 = vst.msk [vmem:[#allocation3 + $0x40] sm:$0xff] %vm312_vm0, %v674_v15  ;;  %1370 = vrcp.f32 %v706_v27 }
  0xaf   : > { %v657_v19 = vpop.xlane.xlu1 %656  ;;  %v655_v20 = vpop.xlane.xlu0 %654 }
  0xb0   : > { %v677_v23 = vadd.f32 %v657_v19, %v613_v16  ;;  %v676_v24 = vadd.f32 %v655_v20, %v612_v17 }
  0xb1   : > { %v708_v45 = vld [vmem:[#allocation3 + $0x30] sm:$0xff]  ;;  %v709_v48 = vld [vmem:[#allocation3 + $0x38] sm:$0xff] }
  0xb2   : > { %694 = vst.msk [vmem:[#allocation3 + $0x58] sm:$0xff] %vm312_vm0, %v677_v23  ;;  %693 = vst.msk [vmem:[#allocation3 + $0x50] sm:$0xff] %vm312_vm0, %v676_v24 }
  0xb3   : > { %v1363_v28 = vpop.eup %1362  ;;  %v661_v29 = vpop.xlane.xlu1 %660 }
  0xb4   : > { %v659_v30 = vpop.xlane.xlu0 %658  ;;  %v679_v32 = vadd.f32 %v661_v29, %v615_v25  ;;  %752 = vperm.xlu0 %1336, %v1363_v28  }
  0xb5   : > { %v678_v34 = vadd.f32 %v659_v30, %v614_v26  ;;  %v711_v35 = vld [vmem:[#allocation3 + $0x48] sm:$0xff]  ;;  %v710_v51 = vld [vmem:[#allocation3 + $0x40] sm:$0xff] }
  0xb6   : > { %696 = vst.msk [vmem:[#allocation3 + $0x68] sm:$0xff] %vm312_vm0, %v679_v32  ;;  %1372 = vrcp.f32 %v711_v35 }
  0xb7   : > { %695 = vst.msk [vmem:[#allocation3 + $0x60] sm:$0xff] %vm312_vm0, %v678_v34  ;;  %v1365_v38 = vpop.eup %1364  ;;  %v665_v39 = vpop.xlane.xlu1 %664  ;;  %1374 = vrcp.f32 %v707_v37 }
  0xb8   : > { %v663_v40 = vpop.xlane.xlu0 %662  ;;  %v681_v41 = vadd.f32 %v665_v39, %v617_v33  ;;  %757 = vperm.xlu1 %1337, %v1365_v38   ;;  %v1367_v43 = vpop.eup %1366 }
  0xb9   : > { %v680_v42 = vadd.f32 %v663_v40, %v616_v36  ;;  %v713_v44 = vld [vmem:[#allocation3 + $0x58] sm:$0xff]  ;;  %v1369_v46 = vpop.eup %1368  ;;  %v712_v54 = vld [vmem:[#allocation3 + $0x50] sm:$0xff] }
  0xba   : > { %698 = vst.msk [vmem:[#allocation3 + $0x78] sm:$0xff] %vm312_vm0, %v681_v41  ;;  %1376 = vrcp.f32 %v713_v44 }
  0xbb   : > { %697 = vst.msk [vmem:[#allocation3 + $0x70] sm:$0xff] %vm312_vm0, %v680_v42  ;;  %1378 = vrcp.f32 %v708_v45  ;;  %v1371_v49 = vpop.eup %1370 }
  0xbc   : > { %762 = vperm.xlu1 %1337, %v1367_v43  }
  0xbd   : > { %v715_v47 = vld [vmem:[#allocation3 + $0x68] sm:$0xff] }
  0xbe   : > { %1380 = vrcp.f32 %v715_v47  ;;  %v714_v57 = vld [vmem:[#allocation3 + $0x60] sm:$0xff] }
  0xbf   : > { %1382 = vrcp.f32 %v709_v48 }
  0xc0   : > { %767 = vperm.xlu1 %1337, %v1369_v46  }
  0xc1   : > { %v717_v50 = vld [vmem:[#allocation3 + $0x78] sm:$0xff] }
  0xc2   : > { %1384 = vrcp.f32 %v717_v50  ;;  %v716_v60 = vld [vmem:[#allocation3 + $0x70] sm:$0xff]  ;;  %v1168_v50 = vld [vmem:[%s1620_s3] ss:$0 sm:$0xff] }
  0xc3   : > { %v1373_v52 = vpop.eup %1372  ;;  %1386 = vrcp.f32 %v710_v51 }
  0xc4   : > { %797 = vperm.xlu0 %1336, %v1373_v52   ;;  %772 = vperm.xlu1 %1337, %v1371_v49   ;;  %v1375_v53 = vpop.eup %1374  ;;  %1388 = vrcp.f32 %v712_v54 }
  0xc5   : > { %1390 = vrcp.f32 %v714_v57 }
  0xc6   : > { %1392 = vrcp.f32 %v716_v60 }
  0xc7   : > { %v1377_v55 = vpop.eup %1376 }
  0xc8   : > { %807 = vperm.xlu0 %1336, %v1377_v55   ;;  %777 = vperm.xlu1 %1337, %v1375_v53   ;;  %v1379_v56 = vpop.eup %1378 }
  0xcb   : > { %v1381_v58 = vpop.eup %1380 }
  0xcc   : > { %817 = vperm.xlu0 %1336, %v1381_v58   ;;  %782 = vperm.xlu1 %1337, %v1379_v56   ;;  %v1383_v59 = vpop.eup %1382 }
  0xcf   : > { %v1385_v61 = vpop.eup %1384 }
  0xd0   : > { %827 = vperm.xlu0 %1336, %v1385_v61   ;;  %787 = vperm.xlu1 %1337, %v1383_v59   ;;  %v1387_v62 = vpop.eup %1386 }
  0xd1   : > { %v1389_v63 = vpop.eup %1388 }
  0xd2   : > { %v1391_v0 = vpop.eup %1390 }
  0xd3   : > { %v1393_v1 = vpop.eup %1392 }
  0xd4   : > { %792 = vperm.xlu1 %1337, %v1387_v62  }
  0xd8   : > { %802 = vperm.xlu1 %1337, %v1389_v63  }
  0xdc   : > { %812 = vperm.xlu1 %1337, %v1391_v0  }
  0xe0   : > { %822 = vperm.xlu1 %1337, %v1393_v1  }
  0xf2   : > { %v1240_v2 = vpop.f32.mrf.mxu0 }
  0xf4   : > { %v507_v3 = vpop.f32.mrf.mxu0 }
  0xf6   : > { %v1241_v4 = vpop.f32.mrf.mxu0 }
  0xf8   : > { %v510_v5 = vpop.f32.mrf.mxu0 }
  0xfa   : > { %v1244_v6 = vpop.f32.mrf.mxu0 }
  0xfc   : > { %v523_v7 = vpop.f32.mrf.mxu0 }
  0xfe   : > { %v1245_v10 = vpop.f32.mrf.mxu0 }
 0x100   : > { %v526_v13 = vpop.f32.mrf.mxu0 }
 0x102   : > { %v1248_v16 = vpop.f32.mrf.mxu0 }
 0x104   : > { %v539_v19 = vpop.f32.mrf.mxu0 }
 0x106   : > { %v1249_v22 = vpop.f32.mrf.mxu0 }
 0x108   : > { %v542_v25 = vpop.f32.mrf.mxu0 }
 0x10a   : > { %v1252_v29 = vpop.f32.mrf.mxu0 }
 0x10c   : > { %v555_v33 = vpop.f32.mrf.mxu0 }
 0x10e   : > { %v1253_v37 = vpop.f32.mrf.mxu0 }
 0x110   : > { %v558_v42 = vpop.f32.mrf.mxu0 }
 0x12f   : > { %v753_v8 = vpop.permute.xlu0 %752 }
 0x130   : > { %v830_v9 = vmul.f32 %v753_v8, %v507_v3 }
 0x132   : > { %1286 = vmatprep.mubr.f32.mxu1 %v830_v9 }
 0x133   : > { %v758_v11 = vpop.permute.xlu1 %757 }
 0x134   : > { %v831_v12 = vmul.f32 %v758_v11, %v510_v5 }
 0x136   : > { %1287 = vmatmul.mubr.f32.vlgmr.msra.gmra.mxu1 %v831_v12 }
 0x137   : > { %v763_v14 = vpop.permute.xlu1 %762 }
 0x138   : > { %v832_v15 = vmul.f32 %v1240_v2, %v763_v14 }
 0x13a   : > { %1289 = vmatprep.mubr.f32.mxu1 %v832_v15 }
 0x13b   : > { %v768_v17 = vpop.permute.xlu1 %767 }
 0x13c   : > { %v833_v18 = vmul.f32 %v1241_v4, %v768_v17 }
 0x13e   : > { %1290 = vmatmul.mubr.f32.gmra.mxu1 %v833_v18 }
 0x13f   : > { %v773_v20 = vpop.permute.xlu1 %772  ;;  %v798_v27 = vpop.permute.xlu0 %797 }
 0x140   : > { %v834_v21 = vmul.f32 %v773_v20, %v523_v7  ;;  %v839_v36 = vmul.f32 %v798_v27, %v542_v25 }
 0x142   : > { %1292 = vmatprep.mubr.f32.mxu1 %v834_v21 }
 0x143   : > { %v778_v23 = vpop.permute.xlu1 %777  ;;  %v808_v32 = vpop.permute.xlu0 %807 }
 0x144   : > { %v835_v24 = vmul.f32 %v778_v23, %v526_v13  ;;  %v841_v41 = vmul.f32 %v1249_v22, %v808_v32 }
 0x146   : > { %1293 = vmatmul.mubr.f32.gmra.mxu1 %v835_v24 }
 0x147   : > { %v783_v26 = vpop.permute.xlu1 %782  ;;  %v818_v39 = vpop.permute.xlu0 %817 }
 0x148   : > { %v836_v28 = vmul.f32 %v1244_v6, %v783_v26  ;;  %v843_v45 = vmul.f32 %v818_v39, %v558_v42 }
 0x14a   : > { %1295 = vmatprep.mubr.f32.mxu1 %v836_v28 }
 0x14b   : > { %v788_v30 = vpop.permute.xlu1 %787  ;;  %v828_v46 = vpop.permute.xlu0 %827 }
 0x14c   : > { %v837_v31 = vmul.f32 %v1245_v10, %v788_v30  ;;  %v845_v49 = vmul.f32 %v1253_v37, %v828_v46 }
 0x14e   : > { %1296 = vmatmul.mubr.f32.gmra.mxu1 %v837_v31 }
 0x14f   : > { %v793_v34 = vpop.permute.xlu1 %792 }
 0x150   : > { %v838_v35 = vmul.f32 %v793_v34, %v539_v19 }
 0x152   : > { %1298 = vmatprep.mubr.f32.mxu1 %v838_v35 }
 0x153   : > { %v803_v38 = vpop.permute.xlu1 %802  ;;  %1299 = vmatmul.mubr.f32.gmra.mxu1 %v839_v36 }
 0x154   : > { %v840_v40 = vmul.f32 %v1248_v16, %v803_v38 }
 0x156   : > { %1301 = vmatprep.mubr.f32.mxu1 %v840_v40 }
 0x157   : > { %v813_v43 = vpop.permute.xlu1 %812  ;;  %1302 = vmatmul.mubr.f32.gmra.mxu1 %v841_v41 }
 0x158   : > { %v842_v44 = vmul.f32 %v813_v43, %v555_v33 }
 0x15a   : > { %1304 = vmatprep.mubr.f32.mxu1 %v842_v44 }
 0x15b   : > { %v823_v47 = vpop.permute.xlu1 %822  ;;  %1305 = vmatmul.mubr.f32.gmra.mxu1 %v843_v45 }
 0x15c   : > { %v844_v48 = vmul.f32 %v1252_v29, %v823_v47 }
 0x15e   : > { %1307 = vmatprep.mubr.f32.mxu1 %v844_v48 }
 0x15f   : > { %1308 = vmatmul.mubr.f32.gmra.mxu1 %v845_v49 }
 0x1f6   : > { %v1288_v51 = vpop.f32.mrf.mxu1 }
 0x1f7   : > { %v941_v52 = vadd.f32 %v1288_v51, %v1168_v50 }
 0x1f8   : > { %v935_v53 = vpop.f32.mrf.mxu1 }
 0x1f9   : > { %1015 = vst [vmem:[%s1590_s19 + $0x8] sm:$0xff] %v941_v52  ;;  %v936_v54 = vadd.f32 %v1168_v50, %v935_v53 }
 0x1fb   : > { %1014 = vst [vmem:[%s1590_s19] sm:$0xff] %v936_v54 }
 0x1fe   : > { %v1291_v55 = vpop.f32.mrf.mxu1 }
 0x1ff   : > { %v951_v56 = vadd.f32 %v1291_v55, %v1168_v50 }
 0x200   : > { %v945_v57 = vpop.f32.mrf.mxu1 }
 0x201   : > { %1017 = vst [vmem:[%s1590_s19 + $0x18] sm:$0xff] %v951_v56  ;;  %v946_v58 = vadd.f32 %v1168_v50, %v945_v57 }
 0x203   : > { %1016 = vst [vmem:[%s1590_s19 + $0x10] sm:$0xff] %v946_v58 }
 0x206   : > { %v1294_v59 = vpop.f32.mrf.mxu1 }
 0x207   : > { %v961_v60 = vadd.f32 %v1294_v59, %v1168_v50 }
 0x208   : > { %v955_v61 = vpop.f32.mrf.mxu1 }
 0x209   : > { %1019 = vst [vmem:[%s1590_s19 + $0x28] sm:$0xff] %v961_v60  ;;  %v956_v62 = vadd.f32 %v1168_v50, %v955_v61 }
 0x20b   : > { %1018 = vst [vmem:[%s1590_s19 + $0x20] sm:$0xff] %v956_v62 }
 0x20e   : > { %v1297_v63 = vpop.f32.mrf.mxu1 }
 0x20f   : > { %v971_v0 = vadd.f32 %v1297_v63, %v1168_v50 }
 0x210   : > { %v965_v1 = vpop.f32.mrf.mxu1 }
 0x211   : > { %1021 = vst [vmem:[%s1590_s19 + $0x38] sm:$0xff] %v971_v0  ;;  %v966_v2 = vadd.f32 %v1168_v50, %v965_v1 }
 0x213   : > { %1020 = vst [vmem:[%s1590_s19 + $0x30] sm:$0xff] %v966_v2  ;;  %v1300_v3 = vpop.f32.mrf.mxu1 }
 0x214   : > { %v981_v4 = vadd.f32 %v1300_v3, %v1168_v50 }
 0x215   : > { %v975_v5 = vpop.f32.mrf.mxu1 }
 0x216   : > { %1023 = vst [vmem:[%s1590_s19 + $0x48] sm:$0xff] %v981_v4  ;;  %v976_v6 = vadd.f32 %v1168_v50, %v975_v5 }
 0x217   : > { %v1303_v7 = vpop.f32.mrf.mxu1 }
 0x218   : > { %1022 = vst [vmem:[%s1590_s19 + $0x40] sm:$0xff] %v976_v6  ;;  %v991_v8 = vadd.f32 %v1303_v7, %v1168_v50 }
 0x219   : > { %v985_v9 = vpop.f32.mrf.mxu1 }
 0x21a   : > { %1025 = vst [vmem:[%s1590_s19 + $0x58] sm:$0xff] %v991_v8  ;;  %v986_v10 = vadd.f32 %v1168_v50, %v985_v9 }
 0x21b   : > { %v1306_v11 = vpop.f32.mrf.mxu1 }
 0x21c   : > { %1024 = vst [vmem:[%s1590_s19 + $0x50] sm:$0xff] %v986_v10  ;;  %v1001_v12 = vadd.f32 %v1306_v11, %v1168_v50 }
 0x21d   : > { %v995_v13 = vpop.f32.mrf.mxu1 }
 0x21e   : > { %1027 = vst [vmem:[%s1590_s19 + $0x68] sm:$0xff] %v1001_v12  ;;  %v996_v14 = vadd.f32 %v1168_v50, %v995_v13 }
 0x21f   : > { %v1309_v15 = vpop.f32.mrf.mxu1 }
 0x220   : > { %1026 = vst [vmem:[%s1590_s19 + $0x60] sm:$0xff] %v996_v14  ;;  %v1011_v16 = vadd.f32 %v1309_v15, %v1168_v50 }
 0x221   : > { %v1005_v17 = vpop.f32.mrf.mxu1 }
 0x222   : > { %1029 = vst [vmem:[%s1590_s19 + $0x78] sm:$0xff] %v1011_v16  ;;  %v1006_v18 = vadd.f32 %v1168_v50, %v1005_v17 }
 0x224   : > { %1028 = vst [vmem:[%s1590_s19 + $0x70] sm:$0xff] %v1006_v18 }
 0x225 PF: > { %s14_s17 = sadd.s32 1, %s1416_s17   ;;  %s1622_s15 = smov %s1412_s16 }
 0x226   : > { %p11_p5 = scmp.ge.s32.totalorder %s14_s17, 4   ;;  %s1623_s16 = smov %s1625_s18 }
 0x228   :  { %13 = sbr.rel (!%p11_p5) target bundleno = 2 (0x2), region = 77 }

</bundles_post_ra>
